<compile_context>
chip_gen: v5e
topology: v5e:2x2
jax: 0.10.0
libtpu: 0.0.40
codegen_flags: <defaults>
</compile_context>

<pallas_src>
import functools

import jax
import jax.numpy as jnp
from jax.experimental import pallas as pl
from jax.experimental.pallas import tpu as pltpu

IN_F, H1_F, H2_F, OUT_F = 10, 16, 16, 3


def ranker_kernel(x_ref, w1_ref, b1_ref, w2_ref, b2_ref, w3_ref, b3_ref, o_ref):
    # x_ref: (10, TILE_B) f32 — one batch tile, batch along lanes.
    x = x_ref[...]

    h1 = jnp.dot(w1_ref[...], x, preferred_element_type=jnp.float32) + b1_ref[...]
    h1 = jnp.maximum(h1, 0.0)                                            # (16, TB)

    h2 = jnp.dot(w2_ref[...], h1, preferred_element_type=jnp.float32) + b2_ref[...]
    h2 = jnp.maximum(h2, 0.0)                                            # (16, TB)

    h3 = jnp.dot(w3_ref[...], h2, preferred_element_type=jnp.float32) + b3_ref[...]
    # Sigmoid: exp -> EUP, approx reciprocal (vrcp) -> no VALU divide in the
    # epilogue (abs error of the approx recip is <~1e-3 on the (0,1) output).
    o_ref[...] = pl.reciprocal(1.0 + jnp.exp(-h3), approx=True)          # (3, TB)


def _round_up(n, m):
    return ((n + m - 1) // m) * m


@functools.partial(jax.jit, static_argnames=("tile_b",))
def ranker_forward(x, params, *, tile_b=16384):
    """y = sigmoid(relu(relu(x @ W1.T + b1) @ W2.T + b2) @ W3.T + b3), x: (B, 10)."""
    w1, b1, w2, b2, w3, b3 = params
    B = x.shape[0]

    # Batch tile = multiple of 128 lanes, clamped to the (padded) batch.
    # At tile_b=16384 the per-step VMEM footprint (double-buffered x/out blocks
    # + hidden activations + weights) is ~4 MiB, well inside the smallest
    # scoped-VMEM budget across generations (16 MiB on v5e, 32 MiB on v6e/v7x).
    tb = min(_round_up(tile_b, 128), _round_up(B, 128))
    b_pad = _round_up(B, tb)
    num_tiles = pl.cdiv(b_pad, tb)

    # Layout plumbing only: batch -> lane axis, pad batch up to the tile grid.
    xt = jnp.pad(x.T.astype(jnp.float32), ((0, 0), (0, b_pad - B)))      # (10, b_pad)

    def resident(shape):
        # Constant block index => stays in VMEM across all grid steps.
        return pl.BlockSpec(shape, lambda i: (0, 0))

    out_t = pl.pallas_call(
        ranker_kernel,
        out_shape=jax.ShapeDtypeStruct((OUT_F, b_pad), jnp.float32),
        grid=(num_tiles,),
        in_specs=[
            pl.BlockSpec((IN_F, tb), lambda i: (0, i)),      # x tile (pipelined)
            resident((H1_F, IN_F)), resident((H1_F, 1)),     # W1, b1
            resident((H2_F, H1_F)), resident((H2_F, 1)),     # W2, b2
            resident((OUT_F, H2_F)), resident((OUT_F, 1)),   # W3, b3
        ],
        out_specs=pl.BlockSpec((OUT_F, tb), lambda i: (0, i)),  # lane-dense store
        compiler_params=pltpu.CompilerParams(
            dimension_semantics=("parallel",),   # shard batch tiles over v7x's 2 TCs
            vmem_limit_bytes=16 * 1024 * 1024,   # fits every generation's scoped VMEM
        ),
    )(xt, w1, b1, w2, b2, w3, b3)

    # Strip batch padding and return in the PyTorch (B, 3) orientation.
    return out_t[:, :B].T


def init_params(key):
    # PyTorch nn.Linear default init: U(-1/sqrt(fan_in), 1/sqrt(fan_in)).
    # Weights keep the PyTorch layout (out_features, in_features); biases (out, 1).
    def linear(k, fan_in, fan_out):
        kw, kb = jax.random.split(k)
        bound = 1.0 / jnp.sqrt(fan_in)
        w = jax.random.uniform(kw, (fan_out, fan_in), jnp.float32, -bound, bound)
        b = jax.random.uniform(kb, (fan_out, 1), jnp.float32, -bound, bound)
        return w, b

    k1, k2, k3 = jax.random.split(key, 3)
    w1, b1 = linear(k1, IN_F, H1_F)
    w2, b2 = linear(k2, H1_F, H2_F)
    w3, b3 = linear(k3, H2_F, OUT_F)
    return w1, b1, w2, b2, w3, b3


def ranker_reference(x, params):
    w1, b1, w2, b2, w3, b3 = params
    h = jnp.maximum(x @ w1.T + b1[:, 0], 0.0)
    h = jnp.maximum(h @ w2.T + b2[:, 0], 0.0)
    return jax.nn.sigmoid(h @ w3.T + b3[:, 0])


if __name__ == "__main__":
    key = jax.random.PRNGKey(0)
    kx, kp = jax.random.split(key)
    params = init_params(kp)

    # Small single-tile case.
    x_small = jax.random.normal(kx, (8, IN_F), dtype=jnp.float32)
    out_small = jax.block_until_ready(ranker_forward(x_small, params))
    ref_small = ranker_reference(x_small, params)
    assert out_small.shape == (8, OUT_F)
    assert jnp.allclose(out_small, ref_small, atol=5e-3, rtol=0.0)

    # Multi-tile case with a ragged batch (exercises the grid + padding path).
    x_big = jax.random.normal(kx, (300, IN_F), dtype=jnp.float32)
    out_big = jax.block_until_ready(ranker_forward(x_big, params, tile_b=128))
    ref_big = ranker_reference(x_big, params)
    assert out_big.shape == (300, OUT_F)
    assert jnp.allclose(out_big, ref_big, atol=5e-3, rtol=0.0)

    print("KERNEL_OK")
</pallas_src>

<mosaic_0001>
module attributes {stable_mosaic.version = 11 : i64} {
  func.func @ranker_kernel(%arg0: i32, %arg1: memref<10x128xf32, #tpu.memory_space<vmem>>, %arg2: memref<16x10xf32, #tpu.memory_space<vmem>>, %arg3: memref<16x1xf32, #tpu.memory_space<vmem>>, %arg4: memref<16x16xf32, #tpu.memory_space<vmem>>, %arg5: memref<16x1xf32, #tpu.memory_space<vmem>>, %arg6: memref<3x16xf32, #tpu.memory_space<vmem>>, %arg7: memref<3x1xf32, #tpu.memory_space<vmem>>, %arg8: memref<3x128xf32, #tpu.memory_space<vmem>>) attributes {dimension_semantics = [#tpu.dimension_semantics<parallel>], iteration_bounds = array<i64: 1>, scalar_prefetch = 0 : i64, scratch_operands = 0 : i64, tpu.core_type = #tpu.core_type<tc>, window_params = [{transform_indices = @transform_0, window_bounds = array<i64: 10, 128>}, {pipeline_mode = #tpu.pipeline_mode<synchronous>, transform_indices = @transform_1, window_bounds = array<i64: 16, 10>}, {pipeline_mode = #tpu.pipeline_mode<synchronous>, transform_indices = @transform_2, window_bounds = array<i64: 16, 1>}, {pipeline_mode = #tpu.pipeline_mode<synchronous>, transform_indices = @transform_3, window_bounds = array<i64: 16, 16>}, {pipeline_mode = #tpu.pipeline_mode<synchronous>, transform_indices = @transform_4, window_bounds = array<i64: 16, 1>}, {pipeline_mode = #tpu.pipeline_mode<synchronous>, transform_indices = @transform_5, window_bounds = array<i64: 3, 16>}, {pipeline_mode = #tpu.pipeline_mode<synchronous>, transform_indices = @transform_6, window_bounds = array<i64: 3, 1>}, {transform_indices = @transform_7, window_bounds = array<i64: 3, 128>}]} {
    %c0 = arith.constant 0 : index
    %c0_0 = arith.constant 0 : index
    %0 = vector.load %arg1[%c0, %c0_0] : memref<10x128xf32, #tpu.memory_space<vmem>>, vector<10x128xf32>
    %c0_1 = arith.constant 0 : index
    %c0_2 = arith.constant 0 : index
    %1 = vector.load %arg2[%c0_1, %c0_2] : memref<16x10xf32, #tpu.memory_space<vmem>>, vector<16x10xf32>
    %cst = arith.constant dense<0.000000e+00> : vector<16x128xf32>
    %2 = tpu.matmul %1, %0, %cst {dimension_numbers = #tpu.dot_dimension_numbers<[1], [0], [0], [1], [0, 0, 1, 1], [], []>} : vector<16x10xf32>, vector<10x128xf32>, vector<16x128xf32> -> vector<16x128xf32>
    %c0_3 = arith.constant 0 : index
    %c0_4 = arith.constant 0 : index
    %3 = vector.load %arg3[%c0_3, %c0_4] : memref<16x1xf32, #tpu.memory_space<vmem>>, vector<16x1xf32>
    %4 = vector.broadcast %3 : vector<16x1xf32> to vector<16x128xf32>
    %5 = arith.addf %2, %4 : vector<16x128xf32>
    %cst_5 = arith.constant 0.000000e+00 : f32
    %6 = vector.broadcast %cst_5 : f32 to vector<16x128xf32>
    %7 = arith.maximumf %5, %6 : vector<16x128xf32>
    %c0_6 = arith.constant 0 : index
    %c0_7 = arith.constant 0 : index
    %8 = vector.load %arg4[%c0_6, %c0_7] : memref<16x16xf32, #tpu.memory_space<vmem>>, vector<16x16xf32>
    %cst_8 = arith.constant dense<0.000000e+00> : vector<16x128xf32>
    %9 = tpu.matmul %8, %7, %cst_8 {dimension_numbers = #tpu.dot_dimension_numbers<[1], [0], [0], [1], [0, 0, 1, 1], [], []>} : vector<16x16xf32>, vector<16x128xf32>, vector<16x128xf32> -> vector<16x128xf32>
    %c0_9 = arith.constant 0 : index
    %c0_10 = arith.constant 0 : index
    %10 = vector.load %arg5[%c0_9, %c0_10] : memref<16x1xf32, #tpu.memory_space<vmem>>, vector<16x1xf32>
    %11 = vector.broadcast %10 : vector<16x1xf32> to vector<16x128xf32>
    %12 = arith.addf %9, %11 : vector<16x128xf32>
    %cst_11 = arith.constant 0.000000e+00 : f32
    %13 = vector.broadcast %cst_11 : f32 to vector<16x128xf32>
    %14 = arith.maximumf %12, %13 : vector<16x128xf32>
    %c0_12 = arith.constant 0 : index
    %c0_13 = arith.constant 0 : index
    %15 = vector.load %arg6[%c0_12, %c0_13] : memref<3x16xf32, #tpu.memory_space<vmem>>, vector<3x16xf32>
    %cst_14 = arith.constant dense<0.000000e+00> : vector<3x128xf32>
    %16 = tpu.matmul %15, %14, %cst_14 {dimension_numbers = #tpu.dot_dimension_numbers<[1], [0], [0], [1], [0, 0, 1, 1], [], []>} : vector<3x16xf32>, vector<16x128xf32>, vector<3x128xf32> -> vector<3x128xf32>
    %c0_15 = arith.constant 0 : index
    %c0_16 = arith.constant 0 : index
    %17 = vector.load %arg7[%c0_15, %c0_16] : memref<3x1xf32, #tpu.memory_space<vmem>>, vector<3x1xf32>
    %18 = vector.broadcast %17 : vector<3x1xf32> to vector<3x128xf32>
    %19 = arith.addf %16, %18 : vector<3x128xf32>
    %cst_17 = arith.constant 0.000000e+00 : f32
    %20 = vector.broadcast %cst_17 : f32 to vector<3x128xf32>
    %21 = arith.subf %20, %19 : vector<3x128xf32>
    %22 = math.exp %21 : vector<3x128xf32>
    %cst_18 = arith.constant 1.000000e+00 : f32
    %23 = vector.broadcast %cst_18 : f32 to vector<3x128xf32>
    %24 = arith.addf %23, %22 : vector<3x128xf32>
    %25 = tpu.reciprocal %24 {approx = true} : vector<3x128xf32> -> vector<3x128xf32>
    %c0_19 = arith.constant 0 : index
    %c0_20 = arith.constant 0 : index
    %26 = vector.load %arg8[%c0_19, %c0_20] : memref<3x128xf32, #tpu.memory_space<vmem>>, vector<3x128xf32>
    tpu.vector_store %arg8[%c0_19, %c0_20], %25 {strides = array<i32>} : memref<3x128xf32, #tpu.memory_space<vmem>>, vector<3x128xf32>,
    return
  }
  func.func @transform_0(%arg0: i32) -> (i32, i32) {
    %c0_i32 = arith.constant 0 : i32
    %c0_i32_0 = arith.constant 0 : i32
    return %c0_i32, %arg0 : i32, i32
  }
  func.func @transform_1(%arg0: i32) -> (i32, i32) {
    %c0_i32 = arith.constant 0 : i32
    %c0_i32_0 = arith.constant 0 : i32
    %c0_i32_1 = arith.constant 0 : i32
    return %c0_i32, %c0_i32_0 : i32, i32
  }
  func.func @transform_2(%arg0: i32) -> (i32, i32) {
    %c0_i32 = arith.constant 0 : i32
    %c0_i32_0 = arith.constant 0 : i32
    %c0_i32_1 = arith.constant 0 : i32
    return %c0_i32, %c0_i32_0 : i32, i32
  }
  func.func @transform_3(%arg0: i32) -> (i32, i32) {
    %c0_i32 = arith.constant 0 : i32
    %c0_i32_0 = arith.constant 0 : i32
    %c0_i32_1 = arith.constant 0 : i32
    return %c0_i32, %c0_i32_0 : i32, i32
  }
  func.func @transform_4(%arg0: i32) -> (i32, i32) {
    %c0_i32 = arith.constant 0 : i32
    %c0_i32_0 = arith.constant 0 : i32
    %c0_i32_1 = arith.constant 0 : i32
    return %c0_i32, %c0_i32_0 : i32, i32
  }
  func.func @transform_5(%arg0: i32) -> (i32, i32) {
    %c0_i32 = arith.constant 0 : i32
    %c0_i32_0 = arith.constant 0 : i32
    %c0_i32_1 = arith.constant 0 : i32
    return %c0_i32, %c0_i32_0 : i32, i32
  }
  func.func @transform_6(%arg0: i32) -> (i32, i32) {
    %c0_i32 = arith.constant 0 : i32
    %c0_i32_0 = arith.constant 0 : i32
    %c0_i32_1 = arith.constant 0 : i32
    return %c0_i32, %c0_i32_0 : i32, i32
  }
  func.func @transform_7(%arg0: i32) -> (i32, i32) {
    %c0_i32 = arith.constant 0 : i32
    %c0_i32_0 = arith.constant 0 : i32
    return %c0_i32, %arg0 : i32, i32
  }
}

</mosaic_0001>

<bundles_post_ra>
// kernel: ranker_forward.1
= control target key start
LH: loop header
LB: loop body
LE: loop exit
PB: predicated region body
PF: predicated region fallthrough
CT: control target
= control target key end

     0   :  { %vm49_vm0 = vcmask 1041408   ;;  %v180_v2 = vmov 0   ;;  %vm42_vm1 = vcmask 80896   ;;  %vm92_vm2 = vcmask 130048   ;;  %s263_s0 = inlined_call_operand.vmem [shape: f32[10,128], index: 0, kind: input, shape index: {}]   ;;  %s264_s1 = inlined_call_operand.vmem [shape: f32[16,10], index: 1, kind: input, shape index: {}]   ;;  %s265_s2 = inlined_call_operand.vmem [shape: f32[16,1], index: 2, kind: input, shape index: {}]   ;;  %s266_s4 = inlined_call_operand.vmem [shape: f32[16,1], index: 4, kind: input, shape index: {}]   ;;  %s267_s3 = inlined_call_operand.vmem [shape: f32[16,16], index: 3, kind: input, shape index: {}]   ;;  %s268_s6 = inlined_call_operand.vmem [shape: f32[3,1], index: 6, kind: input, shape index: {}]   ;;  %s269_s5 = inlined_call_operand.vmem [shape: f32[3,16], index: 5, kind: input, shape index: {}]   ;;  %s270_s7 = inlined_call_operand.vmem [shape: f32[3,128], index: 7, kind: output, shape index: {}]  }
   0x1   :  { %v27_v0 = vld [vmem:[%s263_s0 + $0x8] sm:$0x3]  ;;  %v26_v1 = vld [vmem:[%s263_s0] sm:$0xff]  ;;  %173 = vset.pattern.permute.xlu0 %v180_v2  ;;  %174 = vset.pattern.permute.xlu1 %v180_v2 }
   0x2   :  { %164 = vmatpush.msk.msra.mxu0 %vm49_vm0, %v27_v0  ;;  %170 = vmatpush.msk.msra.mxu3 %vm49_vm0, %v27_v0  ;;  %v28_v3 = vld [vmem:[%s264_s1] sm:$0xff]  ;;  %v29_v4 = vld [vmem:[%s264_s1 + $0x8] sm:$0xff] }
   0x3   :  { %v31_v5 = vld [vmem:[%s265_s2 + $0x8] sm:$0xff]  ;;  %175 = vset.pattern.permute.xlu2 %v180_v2  ;;  %v30_v6 = vld [vmem:[%s265_s2] sm:$0xff] }
   0x4   :  { %39 = vperm.xlu0 %173, %v31_v5   ;;  %68 = vmatpush.msra.mxu0 %v26_v1  ;;  %v81_v7 = vld [vmem:[%s266_s4 + $0x8] sm:$0xff]  ;;  %v80_v8 = vld [vmem:[%s266_s4] sm:$0xff] }
   0x5   :  { %171 = vmatpush.msra.mxu3 %v26_v1  ;;  %165 = vmatmul.msk.f32.vlgmr.msra.gmra.mxu0 %vm42_vm1, %v28_v3  ;;  %v78_v17 = vld [vmem:[%s267_s3] sm:$0xff]  ;;  %v79_v18 = vld [vmem:[%s267_s3 + $0x8] sm:$0xff] }
   0x6   :  { %166 = vmatmul.msk.f32.vlgmr.msra.gmra.mxu3 %vm42_vm1, %v29_v4  ;;  %89 = vperm.xlu1 %174, %v81_v7   ;;  %v125_v19 = vld [vmem:[%s268_s6] sm:$0x7] }
   0x7   :  { %128 = vperm.xlu2 %175, %v125_v19   ;;  %v124_v28 = vld [vmem:[%s269_s5] sm:$0x7] }
   0xc   :  { %34 = vperm.xlu0 %173, %v30_v6  }
   0xe   :  { %84 = vperm.xlu1 %174, %v80_v8  }
  0x61   :  { %v129_v29 = vpop.permute.xlu2 %128 }
  0x76   :  { %v40_v9 = vpop.permute.xlu0 %39 }
  0x78   :  { %v90_v20 = vpop.permute.xlu1 %89 }
  0x7e   :  { %v35_v10 = vpop.permute.xlu0 %34 }
  0x80   :  { %v85_v22 = vpop.permute.xlu1 %84 }
  0x82   :  { %v70_v11 = vpop.f32.mrf.mxu0 }
  0x83   :  { %v71_v13 = vadd.f32 %v70_v11, %v35_v10 }
  0x85   :  { %v76_v16 = vmax.f32 %v71_v13, 0.0 }
  0x89   :  { %v73_v12 = vpop.f32.mrf.mxu3 }
  0x8a   :  { %v74_v14 = vadd.f32 %v73_v12, %v40_v9 }
  0x8c   :  { %v77_v15 = vmax.f32 %v74_v14, 0.0 }
  0x8e   :  { %113 = vmatpush.msra.mxu1 %v77_v15 }
  0x90   :  { %114 = vmatpush.msra.mxu1 %v76_v16 }
  0x91   :  { %167 = vmatmul.msk.f32.vlgmr.msra.gmra.mxu1 %vm92_vm2, %v78_v17 }
  0x99   :  { %168 = vmatmul.msk.f32.gmra.mxu1 %vm92_vm2, %v79_v18 }
 0x10e   :  { %v116_v21 = vpop.f32.mrf.mxu1 }
 0x10f   :  { %v117_v24 = vadd.f32 %v116_v21, %v85_v22 }
 0x111   :  { %v122_v27 = vmax.f32 %v117_v24, 0.0 }
 0x116   :  { %v119_v23 = vpop.f32.mrf.mxu1 }
 0x117   :  { %v120_v25 = vadd.f32 %v119_v23, %v90_v20 }
 0x119   :  { %v123_v26 = vmax.f32 %v120_v25, 0.0 }
 0x11b   :  { %148 = vmatpush.msra.mxu2 %v123_v26 }
 0x11d   :  { %149 = vmatpush.msra.mxu2 %v122_v27 }
 0x11e   :  { %169 = vmatmul.msk.f32.vlgmr.msra.gmra.mxu2 %vm92_vm2, %v124_v28 }
 0x1a1   :  { %v151_v30 = vpop.f32.mrf.mxu2 }
 0x1a2   :  { %v152_v31 = vadd.f32 %v151_v30, %v129_v29 }
 0x1a4   :  { %v154_v32 = vsub.f32 0.0, %v152_v31 }
 0x1a6   :  { %v155_v33 = vmul.f32 1.442695, %v154_v32 }
 0x1a8   :  { %176 = vpow2.f32 %v155_v33 }
 0x1ae   :  { %v177_v34 = vpop.eup %176 }
 0x1af   :  { %v157_v35 = vadd.f32 1.0, %v177_v34 }
 0x1b1   :  { %178 = vrcp.f32 %v157_v35 }
 0x1b7   :  { %v179_v36 = vpop.eup %178 }
 0x1b8   :  { %159 = vst [vmem:[%s270_s7] sm:$0x7] %v179_v36 }

</bundles_post_ra>
